<compile_context>
chip_gen: v7x
topology: tpu7x:2x2x1
jax: 0.10.0
libtpu: 0.0.40
codegen_flags: <defaults>
</compile_context>

<pallas_src>
import itertools

import jax
import jax.numpy as jnp
from jax.experimental import pallas as pl
from jax.experimental.pallas import tpu as pltpu


_LANES = 128
# Below this batch size, a kernel launch is pure overhead -> plain jnp.take.
# (On v5e the bulk path's advantage starts even later; 128 is safe everywhere.)
_PALLAS_MIN_BATCH = 128


def _round_up(x: int, m: int) -> int:
    return ((x + m - 1) // m) * m


# ----------------------------------------------------------------------------
# Pallas kernel: lane-dense in-VMEM gather via one-hot MXU matmul + lane select
# ----------------------------------------------------------------------------
def _gather_kernel(idx_ref, table_ref, out_ref):
    # idx_ref:   (1, Bp)  int32, VMEM   (Bp = round_up(B, 128), padding = 0)
    # table_ref: (128, R) f32,  VMEM    (table_ref[lane, row] = table[row*128+lane])
    # out_ref:   (1, Bp)  int32, VMEM   (lane-dense -> unmasked vst writeback)
    idx = idx_ref[...]                                    # (1, Bp), clamped >= 0
    rows = jax.lax.shift_right_logical(idx, 7)            # idx // 128
    lanes = jnp.bitwise_and(idx, _LANES - 1)              # idx %  128

    r = table_ref.shape[1]
    bp = idx.shape[1]

    # one-hot over rows, transposed: onehot_t[row, b] = (row == rows[b])
    row_iota = jax.lax.broadcasted_iota(jnp.int32, (r, bp), 0)
    onehot_t = jnp.where(row_iota == rows, 1.0, 0.0)       # (R, Bp) f32

    # selected[lane, b] = table[rows[b]*128 + lane]   (exact: one-hot * small ints)
    selected = jnp.dot(table_ref[...], onehot_t,
                       preferred_element_type=jnp.float32)  # (128, Bp)

    # pick the lane: out[b] = selected[lanes[b], b]
    lane_iota = jax.lax.broadcasted_iota(jnp.int32, (_LANES, bp), 0)
    picked = jnp.where(lane_iota == lanes, selected, 0.0)   # (128, Bp)
    vals = jnp.sum(picked, axis=0, keepdims=True)            # (1, Bp) f32

    out_ref[...] = vals.astype(jnp.int32)


def _pack_table_lane_major(table_i32: jax.Array) -> jax.Array:
    """(N,) int32 -> (128, R) f32 with tableT[lane, row] = table[row*128+lane]."""
    n = table_i32.shape[0]
    r = _round_up(max((n + _LANES - 1) // _LANES, 1), _LANES)  # lane-friendly R
    padded = jnp.zeros((r * _LANES,), jnp.int32).at[:n].set(table_i32)
    return padded.reshape(r, _LANES).T.astype(jnp.float32)      # (128, R)


def _table_lookup_pallas(table_lane_major: jax.Array, n_valid: int,
                         idx: jax.Array) -> jax.Array:
    """Large-batch Pallas gather: returns table[idx] as (B,) int32."""
    b = idx.shape[0]
    bp = _round_up(b, _LANES)
    idx32 = jnp.clip(idx.astype(jnp.int32), 0, n_valid - 1)
    idx_pad = jnp.zeros((1, bp), jnp.int32).at[0, :b].set(idx32)

    r = table_lane_major.shape[1]
    cost = pl.CostEstimate(
        flops=2 * _LANES * r * bp,
        transcendentals=0,
        bytes_accessed=int(table_lane_major.size) * 4 + bp * 4 + bp * 4,
    )

    out = pl.pallas_call(
        _gather_kernel,
        out_shape=jax.ShapeDtypeStruct((1, bp), jnp.int32),
        in_specs=[
            pl.BlockSpec(memory_space=pltpu.MemorySpace.VMEM),   # idx (whole array)
            pl.BlockSpec(memory_space=pltpu.MemorySpace.VMEM),   # table (one bulk DMA)
        ],
        out_specs=pl.BlockSpec(memory_space=pltpu.MemorySpace.VMEM),
        cost_estimate=cost,
    )(idx_pad, table_lane_major)
    return out[0, :b]


# ----------------------------------------------------------------------------
# JAX port of CIFARClassificationTask (parameter setup is plain JAX glue).
# ----------------------------------------------------------------------------
_CIFAR_REAL_BIN_TASKS = list(itertools.combinations(range(10), 5))[:126]


class CIFARClassificationTask:
    N = 50000
    DIM = 2

    def __init__(self, task_type="random", task_idx=0, dataset="cifar10",
                 n_classes=2, n_table=None):
        self.task_type = task_type
        if dataset == "tiny_imagenet":
            self.N = 120000
        self.DIM = n_classes
        n = n_table if n_table is not None else self.N

        if task_type == "random":
            # TODO(synk): torch.Generator().manual_seed(task_idx)+torch.randint
            # produces a different sequence than jax.random; labels will not
            # bit-match the PyTorch reference (deterministic per task_idx here).
            g = jax.random.PRNGKey(task_idx)
            table = jax.random.randint(g, (n,), 0, self.DIM, dtype=jnp.int32)
        elif task_type == "real":
            assert self.DIM in (2, 10)
            if dataset == "cifar10":
                if self.DIM == 2:
                    pos = _CIFAR_REAL_BIN_TASKS[task_idx]
                    table = jnp.array([int(i in pos) for i in range(10)],
                                      dtype=jnp.int32)
                else:
                    table = jnp.arange(10, dtype=jnp.int32)
            else:
                # TODO(synk): tiny_imagenet 'real' tasks need
                # assets/tasks/tiny_imagenet_binary_tasks.npy (no file I/O here).
                raise NotImplementedError(dataset)
        elif task_type == "table":
            table = jnp.zeros((n,), dtype=jnp.int32)
        elif task_type.startswith("net"):
            # TODO(synk): 'net*' task types run a ResNet18 defined elsewhere;
            # only the table-lookup task types are implemented here.
            raise NotImplementedError("net* task types require ResNet18")
        else:
            raise NotImplementedError(task_type)

        # Stored once in final dtype/layout; no per-call casts or copies.
        self.lookup_table = table
        self._n = int(table.shape[0])
        if task_type in ("random", "table"):
            # Lane-major f32 copy for the large-batch MXU gather path.
            self._table_lane_major = _pack_table_lane_major(table)
        else:
            self._table_lane_major = None

    def forward(self, x=None, y=None, idx=None):
        if self.task_type in ("random", "table"):
            assert idx is not None
            idx = jnp.asarray(idx)
            if idx.shape[0] >= _PALLAS_MIN_BATCH:
                # Large batch: bulk-stage table to VMEM + in-VMEM gather.
                return _table_lookup_pallas(self._table_lane_major, self._n, idx)
            # Small batch: a pallas_call is pure launch overhead at ~4*B useful
            # bytes; plain take lets XLA fuse the gather into the consumer.
            safe = jnp.clip(idx.astype(jnp.int32), 0, self._n - 1)
            return jnp.take(self.lookup_table, safe, axis=0)
        elif self.task_type in ("real", "real10"):
            assert y is not None
            safe = jnp.clip(jnp.asarray(y).astype(jnp.int32), 0, self._n - 1)
            return jnp.take(self.lookup_table, safe, axis=0)
        elif self.task_type.startswith("net"):
            raise NotImplementedError("net* task types require ResNet18")
        else:
            raise NotImplementedError(self.task_type)

    __call__ = forward


# ----------------------------------------------------------------------------
# Demo / correctness check
# ----------------------------------------------------------------------------
if __name__ == "__main__":
    key = jax.random.PRNGKey(0)

    N_SMALL = 4096      # real module uses N = 50000; small table for the demo
    BATCH_SMALL = 8     # -> fused jnp.take path
    BATCH_LARGE = 256   # -> Pallas bulk-stage + in-VMEM gather path

    task = CIFARClassificationTask(task_type="random", task_idx=0,
                                   n_classes=2, n_table=N_SMALL)

    k_small, k_large, k_y = jax.random.split(key, 3)

    # Small batch: jnp.take path.
    idx_small = jax.random.randint(k_small, (BATCH_SMALL,), 0, N_SMALL,
                                   dtype=jnp.int32)
    out_small = jax.block_until_ready(task(idx=idx_small))
    assert out_small.shape == (BATCH_SMALL,) and out_small.dtype == jnp.int32
    assert bool(jnp.all(out_small == task.lookup_table[idx_small]))

    # Large batch: Pallas kernel path ('random' task).
    idx_large = jax.random.randint(k_large, (BATCH_LARGE,), 0, N_SMALL,
                                   dtype=jnp.int32)
    out_large = jax.block_until_ready(task(idx=idx_large))
    assert out_large.shape == (BATCH_LARGE,) and out_large.dtype == jnp.int32
    assert bool(jnp.all(out_large == task.lookup_table[idx_large]))

    # Large batch: Pallas kernel path ('table' task, all zeros).
    tbl_task = CIFARClassificationTask(task_type="table", n_table=N_SMALL)
    out_tbl = jax.block_until_ready(tbl_task(idx=idx_large))
    assert bool(jnp.all(out_tbl == 0))

    # 'real' task path (10-entry table -> plain take, per perf review).
    real_task = CIFARClassificationTask(task_type="real", task_idx=0, n_classes=2)
    y = jax.random.randint(k_y, (BATCH_SMALL,), 0, 10, dtype=jnp.int32)
    out_real = jax.block_until_ready(real_task(y=y))
    assert bool(jnp.all(out_real == real_task.lookup_table[y]))

    print("KERNEL_OK")
</pallas_src>

<mosaic_0001>
module attributes {stable_mosaic.version = 11 : i64} {
  func.func @_gather_kernel(%arg0: memref<1x256xi32, #tpu.memory_space<vmem>>, %arg1: memref<128x128xf32, #tpu.memory_space<vmem>>, %arg2: memref<1x256xi32, #tpu.memory_space<vmem>>) attributes {dimension_semantics = [], scalar_prefetch = 0 : i64, scratch_operands = 0 : i64, tpu.core_type = #tpu.core_type<tc>} {
    %c0 = arith.constant 0 : index
    %c0_0 = arith.constant 0 : index
    %0 = vector.load %arg0[%c0, %c0_0] : memref<1x256xi32, #tpu.memory_space<vmem>>, vector<1x256xi32>
    %c7_i32 = arith.constant 7 : i32
    %1 = vector.broadcast %c7_i32 : i32 to vector<1x256xi32>
    %2 = arith.shrui %0, %1 : vector<1x256xi32>
    %c127_i32 = arith.constant 127 : i32
    %3 = vector.broadcast %c127_i32 : i32 to vector<1x256xi32>
    %4 = arith.andi %0, %3 : vector<1x256xi32>
    %5 = tpu.iota {dimensions = array<i32: 0>} : vector<128x256xi32>
    %6 = vector.broadcast %2 : vector<1x256xi32> to vector<128x256xi32>
    %7 = arith.cmpi eq, %5, %6 : vector<128x256xi32>
    %cst = arith.constant 1.000000e+00 : f32
    %cst_1 = arith.constant 0.000000e+00 : f32
    %8 = vector.broadcast %cst : f32 to vector<128x256xf32>
    %9 = vector.broadcast %cst_1 : f32 to vector<128x256xf32>
    %10 = arith.select %7, %8, %9 : vector<128x256xi1>, vector<128x256xf32>
    %c0_2 = arith.constant 0 : index
    %c0_3 = arith.constant 0 : index
    %11 = vector.load %arg1[%c0_2, %c0_3] : memref<128x128xf32, #tpu.memory_space<vmem>>, vector<128x128xf32>
    %cst_4 = arith.constant dense<0.000000e+00> : vector<128x256xf32>
    %12 = tpu.matmul %11, %10, %cst_4 {dimension_numbers = #tpu.dot_dimension_numbers<[1], [0], [0], [1], [0, 0, 1, 1], [], []>} : vector<128x128xf32>, vector<128x256xf32>, vector<128x256xf32> -> vector<128x256xf32>
    %13 = tpu.iota {dimensions = array<i32: 0>} : vector<128x256xi32>
    %14 = vector.broadcast %4 : vector<1x256xi32> to vector<128x256xi32>
    %15 = arith.cmpi eq, %13, %14 : vector<128x256xi32>
    %cst_5 = arith.constant 0.000000e+00 : f32
    %16 = vector.broadcast %cst_5 : f32 to vector<128x256xf32>
    %17 = arith.select %15, %12, %16 : vector<128x256xi1>, vector<128x256xf32>
    %cst_6 = arith.constant dense<0.000000e+00> : vector<256xf32>
    %18 = vector.multi_reduction <add>, %17, %cst_6 [0] : vector<128x256xf32> to vector<256xf32>
    %19 = vector.shape_cast %18 : vector<256xf32> to vector<1x256xf32>
    %20 = arith.fptosi %19 : vector<1x256xf32> to vector<1x256xi32>
    %c0_7 = arith.constant 0 : index
    %c0_8 = arith.constant 0 : index
    %21 = vector.load %arg2[%c0_7, %c0_8] : memref<1x256xi32, #tpu.memory_space<vmem>>, vector<1x256xi32>
    tpu.vector_store %arg2[%c0_7, %c0_8], %20 {strides = array<i32>} : memref<1x256xi32, #tpu.memory_space<vmem>>, vector<1x256xi32>,
    return
  }
}

</mosaic_0001>

<bundles_post_ra>
// kernel: tpu_custom_call.1
= control target key start
LH: loop header
LB: loop body
LE: loop exit
PB: predicated region body
PF: predicated region fallthrough
CT: control target
= control target key end

     0   :  { %7 = vsyncpa [#allocation3], 0  ;;  %s1030_s0 = inlined_call_operand.hbm [shape: s32[1,256], index: 0, kind: input, shape index: {}]   ;;  %s1031_s1 = inlined_call_operand.hbm [shape: f32[128,128], index: 1, kind: input, shape index: {}]   ;;  %s1032_s2 = inlined_call_operand.hbm [shape: s32[1,256], index: 2, kind: output, shape index: {}]  }
   0x1   :  { %8 = vsyncpa [#allocation6], 0 }
   0x2   :  { %9 = vsyncpa [#allocation4], 0  ;;  %s623_s9 = smov [#allocation2]   ;;  %s624_s11 = smov [#allocation5]  }
   0x3   :  { %s16_s10 = sshll.u32 %s623_s9, 4  ;;  %s25_s12 = sshll.u32 %s624_s11, 4  ;;  %s17_s10 = int_to_ptr.vmem [resolvable:$true] %s16_s10  ;;  %s646_s12 = int_to_ptr.vmem [resolvable:$true] %s25_s12 }
   0x4   :  { %s551_s15 = scalar_lea.hbm %s1030_s0, 32 }
   0x5   :  { %p552_p0 = scmp.ne.s32.totalorder %s1030_s0, %s551_s15  ;;  %p555_p1 = scmp.lt.u32.totalorder %s551_s15, %s1030_s0 }
   0x7   :  { %p557_p2 = pnand %p555_p1, %p552_p0 }
   0x9   :  { %560 = shalt.err (!%p557_p2)
}
   0xa   :  { %s561_s20 = scalar_lea.vmem %s17_s10, 32  ;;  %p566_p4 = scmp.lt.s32.totalorder %s17_s10, %s17_s10 }
   0xb   :  { %p562_p3 = scmp.ne.s32.totalorder %s17_s10, %s561_s20  ;;  %p567_p5 = scmp.lt.s32.totalorder %s561_s20, %s561_s20 }
   0xd   :  { %p568_p6 = por %p567_p5, %p566_p4 }
   0xf   :  { %p569_p7 = pnand %p568_p6, %p562_p3 }
  0x11   :  { %572 = shalt.err (!%p569_p7)
}
  0x12   :  { %19 = dma.hbm_to_vmem [thread:$0]  %s1030_s0, 32, %s17_s10, [#allocation3]  }
  0x13   :  { %s573_s25 = scalar_lea.hbm %s1031_s1, 2048 }
  0x14   :  { %p574_p8 = scmp.ne.s32.totalorder %s1031_s1, %s573_s25  ;;  %p577_p9 = scmp.lt.u32.totalorder %s573_s25, %s1031_s1 }
  0x16   :  { %p579_p10 = pnand %p577_p9, %p574_p8 }
  0x18   :  { %582 = shalt.err (!%p579_p10)
}
  0x19   :  { %s583_s30 = scalar_lea.vmem %s646_s12, 2048  ;;  %p588_p12 = scmp.lt.s32.totalorder %s646_s12, %s646_s12 }
  0x1a   :  { %p584_p11 = scmp.ne.s32.totalorder %s646_s12, %s583_s30  ;;  %p589_p13 = scmp.lt.s32.totalorder %s583_s30, %s583_s30 }
  0x1c   :  { %p590_p0 = por %p589_p13, %p588_p12 }
  0x1e   :  { %p591_p1 = pnand %p590_p0, %p584_p11 }
  0x20   :  { %594 = shalt.err (!%p591_p1)
}
  0x21   :  { %s625_s0 = smov 128   ;;  %s626_s3 = smov 8  }
  0x22   :  { %31 = dma.hbm_to_vmem [thread:$0]  %s1031_s1, 2048, %s646_s12, [#allocation6], %s625_s0, %s625_s0, %s626_s3  }
  0x23   :  { %617 = dma.done.wait [#allocation3], 32  }
  0x24   :  { %618 = vsyncadd [#allocation3], 4294967264 }
  0x25   :  { %619 = dma.done.wait [#allocation6], 2048  }
  0x26   :  { %620 = vsyncadd [#allocation6], 4294965248  ;;  %v41_v0 = vlaneseq  ;;  %v627_v1 = vmov 0.0   ;;  %v684_v5 = vld [vmem:[#allocation2] sm:$0x3]  ;;  %v130_v34 = vld [vmem:[#allocation5] sm:$0xff] }
  0x27   :  { %210 = vmatprep.mubr.f32.mxu0 %v627_v1  ;;  %258 = vmatprep.mubr.f32.mxu1 %v627_v1  ;;  %v39_v6 = vshrl.u32 %v684_v5, 7  ;;  %v628_v15 = vmov 1.0|1.0   ;;  %v138_v35 = vld [vmem:[#allocation5 + $0x40] sm:$0xff]  ;;  %v131_v36 = vld [vmem:[#allocation5 + $0x8] sm:$0xff]  ;;  %v132_v38 = vld [vmem:[#allocation5 + $0x10] sm:$0xff] }
  0x28   :  { %v680_v2 = vshrl.u32 %v41_v0, 7  ;;  %v139_v37 = vld [vmem:[#allocation5 + $0x48] sm:$0xff]  ;;  %v140_v39 = vld [vmem:[#allocation5 + $0x50] sm:$0xff]  ;;  %v133_v40 = vld [vmem:[#allocation5 + $0x18] sm:$0xff]  ;;  %v40_v50 = vand.u32 127, %v684_v5  ;;  %s630_s1 = smov [#allocation7]  }
  0x29   :  { %v141_v41 = vld [vmem:[#allocation5 + $0x58] sm:$0xff]  ;;  %v134_v42 = vld [vmem:[#allocation5 + $0x20] sm:$0xff]  ;;  %v135_v44 = vld [vmem:[#allocation5 + $0x28] sm:$0xff]  ;;  %s449_s6 = sshll.u32 %s630_s1, 4  ;;  %s450_s6 = int_to_ptr.vmem [resolvable:$true] %s449_s6 }
  0x2a   :  { %v64_v3 = vsub.s32 1, %v680_v2  ;;  %v60_v4 = vsub.s32 0, %v680_v2  ;;  %v688_v7 = vadd.s32 8, %v680_v2  ;;  %v691_v8 = vadd.s32 16, %v680_v2  ;;  %v142_v43 = vld [vmem:[#allocation5 + $0x60] sm:$0xff]  ;;  %v143_v45 = vld [vmem:[#allocation5 + $0x68] sm:$0xff]  ;;  %p600_p3 = scmp.lt.s32.totalorder %s450_s6, %s450_s6 }
  0x2b   :  { %v694_v9 = vadd.s32 24, %v680_v2  ;;  %v705_v12 = vadd.s32 32, %v680_v2  ;;  %v708_v13 = vadd.s32 40, %v680_v2  ;;  %v738_v16 = vadd.s32 48, %v680_v2  ;;  %v136_v46 = vld [vmem:[#allocation5 + $0x30] sm:$0xff]  ;;  %v137_v48 = vld [vmem:[#allocation5 + $0x38] sm:$0xff] }
  0x2c   :  { %v698_v10 = vrot.slane %v39_v6, %v64_v3  ;;  %v702_v11 = vrot.slane %v39_v6, %v60_v4  ;;  %v741_v17 = vadd.s32 56, %v680_v2  ;;  %v766_v20 = vadd.s32 64, %v680_v2  ;;  %v144_v47 = vld [vmem:[#allocation5 + $0x70] sm:$0xff]  ;;  %v145_v49 = vld [vmem:[#allocation5 + $0x78] sm:$0xff]  ;;  %s595_s7 = scalar_lea.vmem %s450_s6, 32 }
  0x2d   :  { %v769_v21 = vadd.s32 72, %v680_v2  ;;  %v798_v24 = vadd.s32 80, %v680_v2  ;;  %v801_v25 = vadd.s32 88, %v680_v2  ;;  %v832_v28 = vadd.s32 96, %v680_v2  ;;  %p596_p2 = scmp.ne.s32.totalorder %s450_s6, %s595_s7  ;;  %p601_p4 = scmp.lt.s32.totalorder %s595_s7, %s595_s7 }
  0x2e   :  { %vm67_vm0 = vcmp.eq.s32.totalorder %v680_v2, %v698_v10  ;;  %vm69_vm1 = vcmp.eq.s32.totalorder %v688_v7, %v698_v10  ;;  %vm66_vm2 = vcmp.eq.s32.totalorder %v680_v2, %v702_v11  ;;  %vm68_vm3 = vcmp.eq.s32.totalorder %v688_v7, %v702_v11 }
  0x2f   :  { %vm718_vm4 = vmpackc.low %vm69_vm1, %vm67_vm0  ;;  %vm71_vm5 = vcmp.eq.s32.totalorder %v691_v8, %v698_v10  ;;  %vm73_vm6 = vcmp.eq.s32.totalorder %v694_v9, %v698_v10  ;;  %vm70_vm7 = vcmp.eq.s32.totalorder %v691_v8, %v702_v11  ;;  %vm72_vm8 = vcmp.eq.s32.totalorder %v694_v9, %v702_v11  ;;  %p602_p5 = por %p601_p4, %p600_p3 }
  0x30   :  { %492 = vmatprep.subr.msk.bf16.mxu0 %vm718_vm4, %v628_v15  ;;  %vm493_vm9 = vmpackc.low %vm68_vm3, %vm66_vm2  ;;  %vm75_vm10 = vcmp.eq.s32.totalorder %v705_v12, %v698_v10  ;;  %vm77_vm11 = vcmp.eq.s32.totalorder %v708_v13, %v698_v10  ;;  %523 = vmatprep.subr.msk.bf16.mxu1 %vm718_vm4, %v628_v15  ;;  %vm74_vm15 = vcmp.eq.s32.totalorder %v705_v12, %v702_v11  ;;  %v835_v29 = vadd.s32 104, %v680_v2 }
  0x31   :  { %494 = vmatpush1.bf16.msk.msra.mxu0 %vm493_vm9, %v628_v15  ;;  %vm495_vm12 = vmpackc.low %vm73_vm6, %vm71_vm5  ;;  %vm76_vm0 = vcmp.eq.s32.totalorder %v708_v13, %v702_v11  ;;  %531 = vmatpush1.bf16.msk.msra.mxu1 %vm493_vm9, %v628_v15  ;;  %vm79_vm1 = vcmp.eq.s32.totalorder %v738_v16, %v698_v10  ;;  %vm81_vm2 = vcmp.eq.s32.totalorder %v741_v17, %v698_v10  ;;  %v866_v32 = vadd.s32 112, %v680_v2  ;;  %p603_p6 = pnand %p602_p5, %p596_p2 }
  0x32   :  { %496 = vmatprep.subr.msk.bf16.mxu0 %vm495_vm12, %v628_v15  ;;  %vm745_vm13 = vmpackc.low %vm72_vm8, %vm70_vm7  ;;  %524 = vmatprep.subr.msk.bf16.mxu1 %vm495_vm12, %v628_v15  ;;  %vm78_vm5 = vcmp.eq.s32.totalorder %v738_v16, %v702_v11  ;;  %vm80_vm6 = vcmp.eq.s32.totalorder %v741_v17, %v702_v11  ;;  %vm83_vm7 = vcmp.eq.s32.totalorder %v766_v20, %v698_v10  ;;  %v869_v33 = vadd.s32 120, %v680_v2 }
  0x33   :  { %vm752_vm14 = vmpackc.low %vm77_vm11, %vm75_vm10  ;;  %vm85_vm8 = vcmp.eq.s32.totalorder %v769_v21, %v698_v10  ;;  %vm82_vm11 = vcmp.eq.s32.totalorder %v766_v20, %v702_v11  ;;  %vm84_vm12 = vcmp.eq.s32.totalorder %v769_v21, %v702_v11  ;;  %v925_v51 = vrot.slane %v40_v50, %v60_v4 }
  0x34   :  { %vm778_vm3 = vmpackc.low %vm76_vm0, %vm74_vm15  ;;  %v929_v52 = vrot.slane %v40_v50, %v64_v3 }
  0x35   :  { %498 = vmatpush1.bf16.msk.msra.mxu0 %vm745_vm13, %v628_v15  ;;  %vm782_vm4 = vmpackc.low %vm81_vm2, %vm79_vm1  ;;  %532 = vmatpush1.bf16.msk.msra.mxu1 %vm745_vm13, %v628_v15  ;;  %vm87_vm13 = vcmp.eq.s32.totalorder %v798_v24, %v698_v10  ;;  %vm86_vm1 = vcmp.eq.s32.totalorder %v798_v24, %v702_v11  ;;  %vm88_vm2 = vcmp.eq.s32.totalorder %v801_v25, %v702_v11 }
  0x36   :  { %500 = vmatprep.subr.msk.bf16.mxu0 %vm752_vm14, %v628_v15  ;;  %525 = vmatprep.subr.msk.bf16.mxu1 %vm752_vm14, %v628_v15  ;;  %vm812_vm9 = vmpackc.low %vm80_vm6, %vm78_vm5  ;;  %vm89_vm14 = vcmp.eq.s32.totalorder %v801_v25, %v698_v10 }
  0x37   :  { %vm816_vm10 = vmpackc.low %vm85_vm8, %vm83_vm7  ;;  %vm90_vm7 = vcmp.eq.s32.totalorder %v832_v28, %v702_v11  ;;  %vm92_vm8 = vcmp.eq.s32.totalorder %v835_v29, %v702_v11 }
  0x38   :  { %vm846_vm15 = vmpackc.low %vm84_vm12, %vm82_vm11 }
  0x39   :  { %502 = vmatpush1.bf16.msk.msra.mxu0 %vm778_vm3, %v628_v15  ;;  %533 = vmatpush1.bf16.msk.msra.mxu1 %vm778_vm3, %v628_v15  ;;  %vm850_vm0 = vmpackc.low %vm89_vm14, %vm87_vm13  ;;  %vm91_vm3 = vcmp.eq.s32.totalorder %v832_v28, %v698_v10  ;;  %vm94_vm13 = vcmp.eq.s32.totalorder %v866_v32, %v702_v11  ;;  %vm96_vm14 = vcmp.eq.s32.totalorder %v869_v33, %v702_v11 }
  0x3a   :  { %504 = vmatprep.subr.msk.bf16.mxu0 %vm782_vm4, %v628_v15  ;;  %526 = vmatprep.subr.msk.bf16.mxu1 %vm782_vm4, %v628_v15  ;;  %vm93_vm4 = vcmp.eq.s32.totalorder %v835_v29, %v698_v10  ;;  %vm513_vm5 = vmpackc.low %vm88_vm2, %vm86_vm1  ;;  %vm316_vm1 = vcmp.eq.s32.totalorder %v680_v2, %v929_v52  ;;  %vm331_vm2 = vcmp.eq.s32.totalorder %v766_v20, %v925_v51 }
  0x3b   :  { %vm515_vm6 = vmpackc.low %vm93_vm4, %vm91_vm3  ;;  %vm332_vm3 = vcmp.eq.s32.totalorder %v766_v20, %v929_v52  ;;  %vm317_vm4 = vcmp.eq.s32.totalorder %v688_v7, %v925_v51 }
  0x3c   :  { %vm517_vm11 = vmpackc.low %vm92_vm8, %vm90_vm7  ;;  %vm334_vm7 = vcmp.eq.s32.totalorder %v769_v21, %v929_v52  ;;  %vm319_vm8 = vcmp.eq.s32.totalorder %v691_v8, %v925_v51 }
  0x3d   :  { %506 = vmatpush1.bf16.msk.msra.mxu0 %vm812_vm9, %v628_v15  ;;  %534 = vmatpush1.bf16.msk.msra.mxu1 %vm812_vm9, %v628_v15  ;;  %vm95_vm9 = vcmp.eq.s32.totalorder %v866_v32, %v698_v10 }
  0x3e   :  { %508 = vmatprep.subr.msk.bf16.mxu0 %vm816_vm10, %v628_v15  ;;  %527 = vmatprep.subr.msk.bf16.mxu1 %vm816_vm10, %v628_v15  ;;  %vm97_vm10 = vcmp.eq.s32.totalorder %v869_v33, %v698_v10 }
  0x3f   :  { %vm519_vm12 = vmpackc.low %vm97_vm10, %vm95_vm9  ;;  %vm320_vm9 = vcmp.eq.s32.totalorder %v691_v8, %v929_v52  ;;  %vm335_vm10 = vcmp.eq.s32.totalorder %v798_v24, %v925_v51 }
  0x41   :  { %510 = vmatpush1.bf16.msk.msra.mxu0 %vm846_vm15, %v628_v15  ;;  %535 = vmatpush1.bf16.msk.msra.mxu1 %vm846_vm15, %v628_v15  ;;  %vm521_vm15 = vmpackc.low %vm96_vm14, %vm94_vm13  ;;  %vm322_vm13 = vcmp.eq.s32.totalorder %v694_v9, %v929_v52  ;;  %vm337_vm14 = vcmp.eq.s32.totalorder %v801_v25, %v925_v51 }
  0x42   :  { %512 = vmatprep.subr.msk.bf16.mxu0 %vm850_vm0, %v628_v15  ;;  %528 = vmatprep.subr.msk.bf16.mxu1 %vm850_vm0, %v628_v15  ;;  %vm315_vm0 = vcmp.eq.s32.totalorder %v680_v2, %v925_v51 }
  0x45   :  { %514 = vmatpush1.bf16.msk.msra.mxu0 %vm513_vm5, %v628_v15  ;;  %536 = vmatpush1.bf16.msk.msra.mxu1 %vm513_vm5, %v628_v15  ;;  %vm318_vm5 = vcmp.eq.s32.totalorder %v688_v7, %v929_v52 }
  0x46   :  { %516 = vmatprep.subr.msk.bf16.mxu0 %vm515_vm6, %v628_v15  ;;  %529 = vmatprep.subr.msk.bf16.mxu1 %vm515_vm6, %v628_v15  ;;  %vm333_vm6 = vcmp.eq.s32.totalorder %v769_v21, %v925_v51 }
  0x49   :  { %518 = vmatpush1.bf16.msk.msra.mxu0 %vm517_vm11, %v628_v15  ;;  %537 = vmatpush1.bf16.msk.msra.mxu1 %vm517_vm11, %v628_v15  ;;  %vm336_vm11 = vcmp.eq.s32.totalorder %v798_v24, %v929_v52 }
  0x4a   :  { %520 = vmatprep.subr.msk.bf16.mxu0 %vm519_vm12, %v628_v15  ;;  %530 = vmatprep.subr.msk.bf16.mxu1 %vm519_vm12, %v628_v15  ;;  %vm321_vm12 = vcmp.eq.s32.totalorder %v694_v9, %v925_v51 }
  0x4d   :  { %522 = vmatpush1.bf16.msk.msra.mxu0 %vm521_vm15, %v628_v15  ;;  %538 = vmatpush1.bf16.msk.msra.mxu1 %vm521_vm15, %v628_v15  ;;  %vm338_vm15 = vcmp.eq.s32.totalorder %v801_v25, %v929_v52 }
  0x50   :  { %211 = vmatmul.mubr.f32.vlgmr.msra.gmra.mrb[0].mxu0 %v130_v34  ;;  %259 = vmatmul.mubr.f32.vlgmr.msra.gmra.mrb[0].mxu1 %v138_v35 }
  0x51   :  { %216 = vmatprep.mubr.f32.mxu0 %v627_v1  ;;  %264 = vmatprep.mubr.f32.mxu1 %v627_v1 }
  0x54   :  { %217 = vmatmul.mubr.f32.gmra.mrb[2].mxu0 %v131_v36  ;;  %265 = vmatmul.mubr.f32.gmra.mrb[2].mxu1 %v139_v37 }
  0x55   :  { %222 = vmatprep.mubr.f32.mxu0 %v627_v1  ;;  %270 = vmatprep.mubr.f32.mxu1 %v627_v1 }
  0x58   :  { %223 = vmatmul.mubr.f32.gmra.mrb[4].mxu0 %v132_v38  ;;  %271 = vmatmul.mubr.f32.gmra.mrb[4].mxu1 %v140_v39 }
  0x59   :  { %228 = vmatprep.mubr.f32.mxu0 %v627_v1  ;;  %276 = vmatprep.mubr.f32.mxu1 %v627_v1 }
  0x5c   :  { %229 = vmatmul.mubr.f32.gmra.mrb[6].mxu0 %v133_v40  ;;  %277 = vmatmul.mubr.f32.gmra.mrb[6].mxu1 %v141_v41 }
  0x5d   :  { %234 = vmatprep.mubr.f32.mxu0 %v627_v1  ;;  %282 = vmatprep.mubr.f32.mxu1 %v627_v1 }
  0x60   :  { %235 = vmatmul.mubr.f32.gmra.mrb[8].mxu0 %v134_v42  ;;  %283 = vmatmul.mubr.f32.gmra.mrb[8].mxu1 %v142_v43 }
  0x61   :  { %240 = vmatprep.mubr.f32.mxu0 %v627_v1  ;;  %288 = vmatprep.mubr.f32.mxu1 %v627_v1 }
  0x64   :  { %241 = vmatmul.mubr.f32.gmra.mrb[10].mxu0 %v135_v44  ;;  %289 = vmatmul.mubr.f32.gmra.mrb[10].mxu1 %v143_v45 }
  0x65   :  { %246 = vmatprep.mubr.f32.mxu0 %v627_v1  ;;  %294 = vmatprep.mubr.f32.mxu1 %v627_v1 }
  0x68   :  { %247 = vmatmul.mubr.f32.gmra.mrb[12].mxu0 %v136_v46  ;;  %295 = vmatmul.mubr.f32.gmra.mrb[12].mxu1 %v144_v47 }
  0x69   :  { %252 = vmatprep.mubr.f32.mxu0 %v627_v1  ;;  %300 = vmatprep.mubr.f32.mxu1 %v627_v1 }
  0x6c   :  { %253 = vmatmul.mubr.f32.gmra.mrb[14].mxu0 %v137_v48  ;;  %301 = vmatmul.mubr.f32.gmra.mrb[14].mxu1 %v145_v49 }
 0x123   :  { %v212_v53 = vpop.f32.mrb[0].mxu0  ;;  %v260_v57 = vpop.f32.mrb[0].mxu1 }
 0x124   :  { %v347_v54 = vsel %vm315_vm0, %v212_v53, 0.0  ;;  %v214_v55 = vpop.f32.mrb[1].mxu0  ;;  %v943_v58 = vsel %vm331_vm2, %v260_v57, 0.0  ;;  %v262_v59 = vpop.f32.mrb[1].mxu1  ;;  %vm323_vm0 = vcmp.eq.s32.totalorder %v705_v12, %v925_v51  ;;  %vm339_vm2 = vcmp.eq.s32.totalorder %v832_v28, %v925_v51 }
 0x125   :  { %v348_v56 = vsel %vm316_vm1, %v214_v55, 0.0  ;;  %v945_v61 = vsel %vm332_vm3, %v262_v59, 0.0  ;;  %vm324_vm1 = vcmp.eq.s32.totalorder %v705_v12, %v929_v52  ;;  %vm340_vm3 = vcmp.eq.s32.totalorder %v832_v28, %v929_v52 }
 0x127   :  { %v218_v60 = vpop.f32.mrb[2].mxu0  ;;  %v266_v4 = vpop.f32.mrb[2].mxu1 }
 0x128   :  { %v349_v62 = vsel %vm317_vm4, %v218_v60, 0.0  ;;  %v220_v63 = vpop.f32.mrb[3].mxu0  ;;  %v955_v6 = vsel %vm333_vm6, %v266_v4, 0.0  ;;  %v268_v7 = vpop.f32.mrb[3].mxu1  ;;  %vm325_vm4 = vcmp.eq.s32.totalorder %v708_v13, %v925_v51  ;;  %vm341_vm6 = vcmp.eq.s32.totalorder %v835_v29, %v925_v51 }
 0x129   :  { %v379_v1 = vadd.f32 %v349_v62, %v347_v54  ;;  %v350_v3 = vsel %vm318_vm5, %v220_v63, 0.0  ;;  %v957_v11 = vsel %vm334_vm7, %v268_v7, 0.0  ;;  %vm326_vm5 = vcmp.eq.s32.totalorder %v708_v13, %v929_v52 }
 0x12a   :  { %v400_v5 = vadd.f32 %v350_v3, %v348_v56  ;;  %vm342_vm7 = vcmp.eq.s32.totalorder %v835_v29, %v929_v52 }
 0x12b   :  { %v224_v10 = vpop.f32.mrb[4].mxu0  ;;  %v272_v8 = vpop.f32.mrb[4].mxu1 }
 0x12c   :  { %v351_v14 = vsel %vm319_vm8, %v224_v10, 0.0  ;;  %v226_v15 = vpop.f32.mrb[5].mxu0  ;;  %v967_v21 = vsel %vm335_vm10, %v272_v8, 0.0  ;;  %v274_v22 = vpop.f32.mrb[5].mxu1  ;;  %vm327_vm8 = vcmp.eq.s32.totalorder %v738_v16, %v925_v51  ;;  %vm343_vm10 = vcmp.eq.s32.totalorder %v866_v32, %v925_v51 }
 0x12d   :  { %v380_v18 = vadd.f32 %v379_v1, %v351_v14  ;;  %v352_v19 = vsel %vm320_vm9, %v226_v15, 0.0  ;;  %v969_v26 = vsel %vm336_vm11, %v274_v22, 0.0  ;;  %vm328_vm9 = vcmp.eq.s32.totalorder %v738_v16, %v929_v52 }
 0x12e   :  { %v401_v20 = vadd.f32 %v400_v5, %v352_v19  ;;  %vm344_vm11 = vcmp.eq.s32.totalorder %v866_v32, %v929_v52 }
 0x12f   :  { %v230_v23 = vpop.f32.mrb[6].mxu0  ;;  %v278_v9 = vpop.f32.mrb[6].mxu1 }
 0x130   :  { %v353_v24 = vsel %vm321_vm12, %v230_v23, 0.0  ;;  %v232_v27 = vpop.f32.mrb[7].mxu0  ;;  %v979_v35 = vsel %vm337_vm14, %v278_v9, 0.0  ;;  %v280_v36 = vpop.f32.mrb[7].mxu1  ;;  %vm329_vm12 = vcmp.eq.s32.totalorder %v741_v17, %v925_v51  ;;  %vm345_vm14 = vcmp.eq.s32.totalorder %v869_v33, %v925_v51 }
 0x131   :  { %v381_v30 = vadd.f32 %v380_v18, %v353_v24  ;;  %v354_v31 = vsel %vm322_vm13, %v232_v27, 0.0  ;;  %v370_v38 = vsel %vm338_vm15, %v280_v36, 0.0  ;;  %vm330_vm13 = vcmp.eq.s32.totalorder %v741_v17, %v929_v52 }
 0x132   :  { %v402_v34 = vadd.f32 %v401_v20, %v354_v31  ;;  %vm346_vm15 = vcmp.eq.s32.totalorder %v869_v33, %v929_v52 }
 0x133   :  { %v236_v37 = vpop.f32.mrb[8].mxu0  ;;  %v284_v42 = vpop.f32.mrb[8].mxu1 }
 0x134   :  { %v355_v39 = vsel %vm323_vm0, %v236_v37, 0.0  ;;  %v238_v25 = vpop.f32.mrb[9].mxu0  ;;  %v371_v43 = vsel %vm339_vm2, %v284_v42, 0.0  ;;  %v286_v44 = vpop.f32.mrb[9].mxu1  ;;  %vm440_vm0 = vcmp.lt.s32.totalorder %v41_v0, 256 }
 0x135   :  { %v382_v40 = vadd.f32 %v381_v30, %v355_v39  ;;  %v356_v41 = vsel %vm324_vm1, %v238_v25, 0.0  ;;  %v372_v46 = vsel %vm340_vm3, %v286_v44, 0.0 }
 0x136   :  { %v403_v12 = vadd.f32 %v402_v34, %v356_v41 }
 0x137   :  { %v242_v45 = vpop.f32.mrb[10].mxu0  ;;  %v290_v50 = vpop.f32.mrb[10].mxu1 }
 0x138   :  { %v357_v47 = vsel %vm325_vm4, %v242_v45, 0.0  ;;  %v244_v48 = vpop.f32.mrb[11].mxu0  ;;  %v373_v13 = vsel %vm341_vm6, %v290_v50, 0.0  ;;  %v292_v54 = vpop.f32.mrb[11].mxu1 }
 0x139   :  { %v383_v28 = vadd.f32 %v382_v40, %v357_v47  ;;  %v358_v49 = vsel %vm326_vm5, %v244_v48, 0.0  ;;  %v374_v56 = vsel %vm342_vm7, %v292_v54, 0.0 }
 0x13a   :  { %v404_v53 = vadd.f32 %v403_v12, %v358_v49 }
 0x13b   :  { %v248_v55 = vpop.f32.mrb[12].mxu0  ;;  %v296_v62 = vpop.f32.mrb[12].mxu1 }
 0x13c   :  { %v359_v57 = vsel %vm327_vm8, %v248_v55, 0.0  ;;  %v250_v59 = vpop.f32.mrb[13].mxu0  ;;  %v375_v16 = vsel %vm343_vm10, %v296_v62, 0.0  ;;  %v298_v1 = vpop.f32.mrb[13].mxu1 }
 0x13d   :  { %v384_v29 = vadd.f32 %v383_v28, %v359_v57  ;;  %v360_v60 = vsel %vm328_vm9, %v250_v59, 0.0  ;;  %v376_v4 = vsel %vm344_vm11, %v298_v1, 0.0 }
 0x13e   :  { %v405_v63 = vadd.f32 %v404_v53, %v360_v60 }
 0x13f   :  { %v254_v3 = vpop.f32.mrb[14].mxu0  ;;  %v302_v14 = vpop.f32.mrb[14].mxu1 }
 0x140   :  { %v361_v5 = vsel %vm329_vm12, %v254_v3, 0.0  ;;  %v256_v7 = vpop.f32.mrb[15].mxu0  ;;  %v377_v18 = vsel %vm345_vm14, %v302_v14, 0.0  ;;  %v304_v19 = vpop.f32.mrb[15].mxu1 }
 0x141   :  { %v385_v32 = vadd.f32 %v384_v29, %v361_v5  ;;  %v362_v10 = vsel %vm330_vm13, %v256_v7, 0.0  ;;  %v378_v8 = vsel %vm346_vm15, %v304_v19, 0.0 }
 0x142   :  { %v406_v15 = vadd.f32 %v405_v63, %v362_v10 }
 0x143   :  { %v386_v17 = vadd.f32 %v385_v32, %v943_v58 }
 0x144   :  { %v407_v20 = vadd.f32 %v406_v15, %v945_v61 }
 0x145   :  { %v387_v22 = vadd.f32 %v386_v17, %v955_v6 }
 0x146   :  { %v408_v51 = vadd.f32 %v407_v20, %v957_v11 }
 0x147   :  { %v388_v23 = vadd.f32 %v387_v22, %v967_v21 }
 0x148   :  { %v409_v24 = vadd.f32 %v408_v51, %v969_v26  ;;  %v629_v26 = vmov 1966171168  }
 0x149   :  { %v389_v33 = vadd.f32 %v388_v23, %v979_v35  ;;  %v425_v42 = vunpack.c.l.s4 %v629_v26 }
 0x14a   :  { %v410_v52 = vadd.f32 %v409_v24, %v370_v38 }
 0x14b   :  { %v390_v27 = vadd.f32 %v389_v33, %v371_v43  ;;  %v426_v44 = vunpack.c.0.s8 %v425_v42 }
 0x14c   :  { %v411_v30 = vadd.f32 %v410_v52, %v372_v46 }
 0x14d   :  { %v391_v31 = vadd.f32 %v390_v27, %v373_v13  ;;  %v429_v28 = vsub.s32 %v426_v44, %v680_v2 }
 0x14e   :  { %v412_v9 = vadd.f32 %v411_v30, %v374_v56 }
 0x14f   :  { %v392_v34 = vadd.f32 %v391_v31, %v375_v16 }
 0x150   :  { %v413_v58 = vadd.f32 %v412_v9, %v376_v4 }
 0x151   :  { %v393_v36 = vadd.f32 %v392_v34, %v377_v18 }
 0x152   :  { %v414_v37 = vadd.f32 %v413_v58, %v378_v8 }
 0x153   :  { %v394_v61 = vrot.slane %v393_v36, 4 }
 0x154   :  { %v415_v39 = vrot.slane %v414_v37, 4 }
 0x155   :  { %v395_v6 = vadd.f32 %v394_v61, %v393_v36 }
 0x156   :  { %v416_v25 = vadd.f32 %v415_v39, %v414_v37 }
 0x157   :  { %v396_v11 = vrot.slane %v395_v6, 2 }
 0x158   :  { %v417_v40 = vrot.slane %v416_v25, 2 }
 0x159   :  { %v397_v21 = vadd.f32 %v396_v11, %v395_v6 }
 0x15a   :  { %v418_v41 = vadd.f32 %v417_v40, %v416_v25 }
 0x15b   :  { %v398_v35 = vrot.slane %v397_v21, 1 }
 0x15c   :  { %v419_v38 = vrot.slane %v418_v41, 1 }
 0x15d   :  { %v399_v12 = vadd.f32 %v398_v35, %v397_v21 }
 0x15e   :  { %v420_v43 = vadd.f32 %v419_v38, %v418_v41 }
 0x15f   :  { %v539_v45 = vtrunc.f32 %v399_v12 }
 0x160   :  { %v541_v46 = vtrunc.f32 %v420_v43 }
 0x161   :  { %v540_v47 = vcvt.f32.s32 %v539_v45 }
 0x162   :  { %v542_v48 = vcvt.f32.s32 %v541_v46 }
 0x164   :  { %v423_v49 = vcombine.low %v540_v47, %v542_v48 }
 0x166   :  { %v430_v50 = vrot.slane %v423_v49, %v429_v28 }
 0x168   :  { %v437_v53 = vrot.slane %v430_v50, %v429_v28 }
 0x16a   :  { %442 = vst.msk [vmem:[#allocation7] sm:$0x3] %vm440_vm0, %v437_v53 }
 0x16b   :  { %606 = shalt.err (!%p603_p6)
}
 0x16c   :  { %s607_s10 = scalar_lea.hbm %s1032_s2, 32 }
 0x16d   :  { %p608_p7 = scmp.ne.s32.totalorder %s1032_s2, %s607_s10  ;;  %p611_p8 = scmp.lt.u32.totalorder %s607_s10, %s1032_s2 }
 0x16f   :  { %p613_p9 = pnand %p611_p8, %p608_p7 }
 0x171   :  { %616 = shalt.err (!%p613_p9)
}
 0x172   :  { %452 = dma.vmem_to_hbm [thread:$0]  %s450_s6, 32, %s1032_s2, [#allocation4]  }
 0x173   :  { %621 = dma.done.wait [#allocation4], 32  }
 0x174   :  { %622 = vsyncadd [#allocation4], 4294967264 }
 0x175   :  { %456 = vsyncpa [#allocation3], 1 }
 0x176   :  { %457 = vsyncpa [#allocation6], 1 }
 0x177   :  { %458 = vsyncpa [#allocation4], 1 }

</bundles_post_ra>
